<compile_context>
chip_gen: v7x
topology: tpu7x:2x2x1
jax: 0.10.0
libtpu: 0.0.40
codegen_flags: <defaults>
</compile_context>

<pallas_src>
import functools

import jax
import jax.numpy as jnp
from jax.experimental import pallas as pl
from jax.experimental.pallas import tpu as pltpu

ALPHA = 0.25
GAMMA = 2
LANES = 128
MAX_ROW_TILE = 4096   # 4096 x 128 f32 = 2 MiB per input block; 2 inputs x 2 pipeline
                      # buffers + (1,128) accumulator ~= 8 MiB VMEM (< v5e 16 MiB default).
NUM_CORES = 2         # leading "parallel" grid axis (2-TensorCore sharding on v7x)
# TODO(synk): on v7x, if plain "parallel" does not shard the leading axis across both
# TensorCores, switch dimension_semantics to (pltpu.CORE_PARALLEL, pltpu.ARBITRARY).


def _round_up(x, m):
    return ((x + m - 1) // m) * m


def _sublane_multiple(dtype):
    # native f32 tile is (8,128); packed dtypes need 16 (2-byte) / 32 (1-byte) sublanes.
    itemsize = max(jnp.dtype(dtype).itemsize, 1)
    return max(8, (4 // itemsize) * 8)


def _bce_elementwise(p, t, binary_targets):
    """Per-element binary cross entropy with PyTorch's log clamp at -100 (f32 compute)."""
    p = p.astype(jnp.float32)
    t = t.astype(jnp.float32)
    if binary_targets:
        # one log per element (halves EUP pushes); only exact for targets in {0, 1}.
        return -jnp.maximum(jnp.log(jnp.where(t > 0.5, p, 1.0 - p)), -100.0)
    log_p = jnp.maximum(jnp.log(p), -100.0)
    log_1mp = jnp.maximum(jnp.log(1.0 - p), -100.0)
    return -(t * log_p + (1.0 - t) * log_1mp)


def _bce_sum_kernel(x_ref, t_ref, o_ref, acc_ref, *,
                    rows_valid, row_tile, tiles_per_core, binary_targets):
    c = pl.program_id(0)   # core / row-range split ("parallel")
    i = pl.program_id(1)   # row tiles within this core's range ("arbitrary", reduction)

    @pl.when(i == 0)
    def _():
        acc_ref[...] = jnp.zeros_like(acc_ref)

    # Elementwise BCE on the tile; inputs stay narrow in HBM, upcast here.
    bce = _bce_elementwise(x_ref[...], t_ref[...], binary_targets)

    # First logical row of this block. Only the block that straddles rows_valid (or a
    # clamped, fully over-shot block) pays for the mask arithmetic; interior tiles take
    # the bare accumulate branch.
    row0 = (c * tiles_per_core + i) * row_tile
    needs_mask = row0 + row_tile > rows_valid

    @pl.when(needs_mask)
    def _():
        # Garbage rows of a partial block may hold NaN in `bce`; keep this a select
        # (jnp.where), NOT an arithmetic multiply, so NaN does not propagate.
        row_ids = row0 + jax.lax.broadcasted_iota(jnp.int32, (row_tile, LANES), 0)
        masked = jnp.where(row_ids < rows_valid, bce, 0.0)
        acc_ref[...] += jnp.sum(masked, axis=0, keepdims=True)

    @pl.when(jnp.logical_not(needs_mask))
    def _():
        # Hot path: pure VPU adds + one sublane fold; no big-accumulator RMW traffic.
        acc_ref[...] += jnp.sum(bce, axis=0, keepdims=True)

    @pl.when(i == pl.num_programs(1) - 1)
    def _():
        o_ref[0] = acc_ref[...]   # (1, LANES) per-core partial; cross-lane sum in wrapper


def focal_loss(inputs, targets, alpha=ALPHA, gamma=GAMMA, binary_targets=False):
    """Focal loss over probabilities `inputs` in (0,1) and `targets` of the same shape.

    Any shape / dtype; compute is f32 in-kernel, so feeding bf16 (or fp8 on v7x)
    probabilities/targets roughly halves HBM traffic for this memory-bound kernel.
    Set binary_targets=True only when targets are strictly {0,1} (single-log fast path).
    """
    n_total = int(inputs.size)
    x = inputs.reshape(-1)
    t = targets.reshape(-1)

    rows = n_total // LANES
    tail = n_total - rows * LANES

    bce_sum = jnp.float32(0.0)

    if tail:
        # <128-element tail handled with plain jnp — avoids a full-array pad copy.
        bce_sum = bce_sum + jnp.sum(
            _bce_elementwise(x[rows * LANES:], t[rows * LANES:], binary_targets))

    if rows:
        x2d = x[: rows * LANES].reshape(rows, LANES)   # no-op slice when already aligned
        t2d = t[: rows * LANES].reshape(rows, LANES)

        sub = max(_sublane_multiple(x2d.dtype), _sublane_multiple(t2d.dtype))
        if rows < sub:
            # tiny input: single block equal to the full sublane extent (always legal)
            row_tile = rows
            tiles_per_core = 1
        else:
            tiles_per_core = -(-rows // (NUM_CORES * MAX_ROW_TILE))
            row_tile = min(MAX_ROW_TILE,
                           _round_up(-(-rows // (NUM_CORES * tiles_per_core)), sub))

        n_blocks = -(-rows // row_tile)
        if NUM_CORES * tiles_per_core > n_blocks:
            # Rectangular grid over-shoots the real block count: clamp the block index so
            # the auto-DMA never walks past the array; over-shot logical blocks are fully
            # zeroed by the in-kernel mask branch.
            last_block = n_blocks - 1

            def in_index_map(c, i):
                return (jnp.minimum(c * tiles_per_core + i, last_block), 0)
        else:
            def in_index_map(c, i):
                return (c * tiles_per_core + i, 0)

        kernel = functools.partial(
            _bce_sum_kernel,
            rows_valid=int(rows),                 # plain Python ints -> baked-in constants
            row_tile=int(row_tile),
            tiles_per_core=int(tiles_per_core),
            binary_targets=bool(binary_targets))

        n_kernel_elems = rows * LANES
        logs_per_elem = 1 if binary_targets else 2
        cost = pl.CostEstimate(
            flops=8 * n_kernel_elems,
            transcendentals=logs_per_elem * n_kernel_elems,
            bytes_accessed=(n_kernel_elems
                            * (jnp.dtype(x2d.dtype).itemsize + jnp.dtype(t2d.dtype).itemsize)
                            + NUM_CORES * LANES * 4))

        partials = pl.pallas_call(
            kernel,
            out_shape=jax.ShapeDtypeStruct((NUM_CORES, 1, LANES), jnp.float32),
            grid_spec=pltpu.PrefetchScalarGridSpec(
                num_scalar_prefetch=0,
                grid=(NUM_CORES, tiles_per_core),
                in_specs=[
                    pl.BlockSpec((row_tile, LANES), in_index_map),
                    pl.BlockSpec((row_tile, LANES), in_index_map),
                ],
                out_specs=pl.BlockSpec((1, 1, LANES), lambda c, i: (c, 0, 0)),
                scratch_shapes=[pltpu.VMEM((1, LANES), jnp.float32)],
            ),
            compiler_params=pltpu.CompilerParams(
                # ~8 MiB working set (f32): fits v5e's 16 MiB scoped-VMEM default and
                # v6e/v7x's 32 MiB — no vmem_limit_bytes override needed at this tile size.
                dimension_semantics=("parallel", "arbitrary")),
            cost_estimate=cost,
        )(x2d, t2d)

        bce_sum = bce_sum + jnp.sum(partials)

    bce_mean = bce_sum / jnp.float32(n_total)
    return alpha * (1.0 - jnp.exp(-bce_mean)) ** gamma * bce_mean


def focal_loss_ref(inputs, targets, alpha=ALPHA, gamma=GAMMA):
    bce = jnp.mean(_bce_elementwise(inputs, targets, binary_targets=False))
    return alpha * (1.0 - jnp.exp(-bce)) ** gamma * bce


if __name__ == "__main__":
    key = jax.random.PRNGKey(0)
    k1, k2, k3, k4 = jax.random.split(key, 4)

    # Segmentation-style use: (B, C, H, W) probabilities + binary targets (lane-aligned).
    shape = (2, 4, 16, 16)
    logits = jax.random.normal(k1, shape, dtype=jnp.float32)
    inputs = jax.nn.sigmoid(logits)                        # probabilities in (0, 1)
    targets = (jax.random.uniform(k2, shape) > 0.5).astype(jnp.float32)

    loss = focal_loss(inputs, targets)
    jax.block_until_ready(loss)
    ref = focal_loss_ref(inputs, targets)
    assert jnp.allclose(loss, ref, rtol=1e-5, atol=1e-6), (loss, ref)

    # Single-log fast path (targets strictly {0,1}) must match the two-log reference.
    loss_bin = focal_loss(inputs, targets, binary_targets=True)
    jax.block_until_ready(loss_bin)
    assert jnp.allclose(loss_bin, ref, rtol=1e-5, atol=1e-6), (loss_bin, ref)

    # Unaligned size: exercises the in-kernel partial-block mask branch and the jnp tail.
    n_odd = 5000 + 8                                       # rows=39, tail=8
    p_odd = jax.nn.sigmoid(jax.random.normal(k3, (n_odd,), dtype=jnp.float32))
    t_odd = (jax.random.uniform(k4, (n_odd,)) > 0.5).astype(jnp.float32)
    loss_odd = focal_loss(p_odd, t_odd)
    jax.block_until_ready(loss_odd)
    ref_odd = focal_loss_ref(p_odd, t_odd)
    assert jnp.allclose(loss_odd, ref_odd, rtol=1e-5, atol=1e-6), (loss_odd, ref_odd)

    print("KERNEL_OK")
</pallas_src>

<mosaic_0001>
module attributes {stable_mosaic.version = 11 : i64} {
  func.func @_bce_sum_kernel(%arg0: i32, %arg1: i32, %arg2: memref<8x128xf32, #tpu.memory_space<vmem>>, %arg3: memref<8x128xf32, #tpu.memory_space<vmem>>, %arg4: memref<1x1x128xf32, #tpu.memory_space<vmem>>, %arg5: memref<1x128xf32, #tpu.memory_space<vmem>>) attributes {dimension_semantics = [#tpu.dimension_semantics<parallel>, #tpu.dimension_semantics<arbitrary>], iteration_bounds = array<i64: 2, 1>, scalar_prefetch = 0 : i64, scratch_operands = 1 : i64, tpu.core_type = #tpu.core_type<tc>, window_params = [{transform_indices = @transform_0, window_bounds = array<i64: 8, 128>}, {transform_indices = @transform_1, window_bounds = array<i64: 8, 128>}, {transform_indices = @transform_2, window_bounds = array<i64: 1, 1, 128>}]} {
    %c0_i32 = arith.constant 0 : i32
    %0 = arith.cmpi eq, %arg1, %c0_i32 : i32
    %1 = arith.extui %0 : i1 to i32
    %c0_i32_0 = arith.constant 0 : i32
    %2 = arith.cmpi ne, %1, %c0_i32_0 : i32
    scf.if %2 {
      %cst_13 = arith.constant 0.000000e+00 : f32
      %33 = vector.broadcast %cst_13 : f32 to vector<1x128xf32>
      %c0_14 = arith.constant 0 : index
      %c0_15 = arith.constant 0 : index
      %34 = vector.load %arg5[%c0_14, %c0_15] : memref<1x128xf32, #tpu.memory_space<vmem>>, vector<1x128xf32>
      tpu.vector_store %arg5[%c0_14, %c0_15], %33 {strides = array<i32>} : memref<1x128xf32, #tpu.memory_space<vmem>>, vector<1x128xf32>,
    } else {
    }
    %c0 = arith.constant 0 : index
    %c0_1 = arith.constant 0 : index
    %3 = vector.load %arg2[%c0, %c0_1] : memref<8x128xf32, #tpu.memory_space<vmem>>, vector<8x128xf32>
    %c0_2 = arith.constant 0 : index
    %c0_3 = arith.constant 0 : index
    %4 = vector.load %arg3[%c0_2, %c0_3] : memref<8x128xf32, #tpu.memory_space<vmem>>, vector<8x128xf32>
    %5 = math.log %3 : vector<8x128xf32>
    %cst = arith.constant -1.000000e+02 : f32
    %6 = vector.broadcast %cst : f32 to vector<8x128xf32>
    %7 = arith.maximumf %5, %6 : vector<8x128xf32>
    %cst_4 = arith.constant 1.000000e+00 : f32
    %8 = vector.broadcast %cst_4 : f32 to vector<8x128xf32>
    %9 = arith.subf %8, %3 : vector<8x128xf32>
    %10 = math.log %9 : vector<8x128xf32>
    %cst_5 = arith.constant -1.000000e+02 : f32
    %11 = vector.broadcast %cst_5 : f32 to vector<8x128xf32>
    %12 = arith.maximumf %10, %11 : vector<8x128xf32>
    %13 = arith.mulf %4, %7 : vector<8x128xf32>
    %cst_6 = arith.constant 1.000000e+00 : f32
    %14 = vector.broadcast %cst_6 : f32 to vector<8x128xf32>
    %15 = arith.subf %14, %4 : vector<8x128xf32>
    %16 = arith.mulf %15, %12 : vector<8x128xf32>
    %17 = arith.addf %13, %16 : vector<8x128xf32>
    %cst_7 = arith.constant 0.000000e+00 : f32
    %18 = vector.broadcast %cst_7 : f32 to vector<8x128xf32>
    %19 = arith.subf %18, %17 : vector<8x128xf32>
    %c1_i32 = arith.constant 1 : i32
    %20 = arith.muli %arg0, %c1_i32 : i32
    %21 = arith.addi %20, %arg1 : i32
    %c8_i32 = arith.constant 8 : i32
    %22 = arith.muli %21, %c8_i32 : i32
    %c8_i32_8 = arith.constant 8 : i32
    %23 = arith.addi %22, %c8_i32_8 : i32
    %c16_i32 = arith.constant 16 : i32
    %24 = arith.cmpi sgt, %23, %c16_i32 : i32
    %25 = arith.extui %24 : i1 to i32
    %c0_i32_9 = arith.constant 0 : i32
    %26 = arith.cmpi ne, %25, %c0_i32_9 : i32
    scf.if %26 {
      %33 = tpu.iota {dimensions = array<i32: 0>} : vector<8x128xi32>
      %34 = vector.broadcast %22 : i32 to vector<8x128xi32>
      %35 = arith.addi %34, %33 : vector<8x128xi32>
      %c16_i32_13 = arith.constant 16 : i32
      %36 = vector.broadcast %c16_i32_13 : i32 to vector<8x128xi32>
      %37 = arith.cmpi slt, %35, %36 : vector<8x128xi32>
      %cst_14 = arith.constant 0.000000e+00 : f32
      %38 = vector.broadcast %cst_14 : f32 to vector<8x128xf32>
      %39 = arith.select %37, %19, %38 : vector<8x128xi1>, vector<8x128xf32>
      %c0_15 = arith.constant 0 : index
      %c0_16 = arith.constant 0 : index
      %40 = vector.load %arg5[%c0_15, %c0_16] : memref<1x128xf32, #tpu.memory_space<vmem>>, vector<1x128xf32>
      %cst_17 = arith.constant dense<0.000000e+00> : vector<128xf32>
      %41 = vector.multi_reduction <add>, %39, %cst_17 [0] : vector<8x128xf32> to vector<128xf32>
      %42 = vector.shape_cast %41 : vector<128xf32> to vector<1x128xf32>
      %43 = arith.addf %40, %42 : vector<1x128xf32>
      %c0_18 = arith.constant 0 : index
      %c0_19 = arith.constant 0 : index
      %44 = vector.load %arg5[%c0_18, %c0_19] : memref<1x128xf32, #tpu.memory_space<vmem>>, vector<1x128xf32>
      tpu.vector_store %arg5[%c0_18, %c0_19], %43 {strides = array<i32>} : memref<1x128xf32, #tpu.memory_space<vmem>>, vector<1x128xf32>,
    } else {
    }
    %true = arith.constant true
    %27 = arith.xori %24, %true : i1
    %28 = arith.extui %27 : i1 to i32
    %c0_i32_10 = arith.constant 0 : i32
    %29 = arith.cmpi ne, %28, %c0_i32_10 : i32
    scf.if %29 {
      %c0_13 = arith.constant 0 : index
      %c0_14 = arith.constant 0 : index
      %33 = vector.load %arg5[%c0_13, %c0_14] : memref<1x128xf32, #tpu.memory_space<vmem>>, vector<1x128xf32>
      %cst_15 = arith.constant dense<0.000000e+00> : vector<128xf32>
      %34 = vector.multi_reduction <add>, %19, %cst_15 [0] : vector<8x128xf32> to vector<128xf32>
      %35 = vector.shape_cast %34 : vector<128xf32> to vector<1x128xf32>
      %36 = arith.addf %33, %35 : vector<1x128xf32>
      %c0_16 = arith.constant 0 : index
      %c0_17 = arith.constant 0 : index
      %37 = vector.load %arg5[%c0_16, %c0_17] : memref<1x128xf32, #tpu.memory_space<vmem>>, vector<1x128xf32>
      tpu.vector_store %arg5[%c0_16, %c0_17], %36 {strides = array<i32>} : memref<1x128xf32, #tpu.memory_space<vmem>>, vector<1x128xf32>,
    } else {
    }
    %c0_i32_11 = arith.constant 0 : i32
    %30 = arith.cmpi eq, %arg1, %c0_i32_11 : i32
    %31 = arith.extui %30 : i1 to i32
    %c0_i32_12 = arith.constant 0 : i32
    %32 = arith.cmpi ne, %31, %c0_i32_12 : i32
    scf.if %32 {
      %c0_13 = arith.constant 0 : index
      %c0_14 = arith.constant 0 : index
      %33 = vector.load %arg5[%c0_13, %c0_14] : memref<1x128xf32, #tpu.memory_space<vmem>>, vector<1x128xf32>
      %c0_15 = arith.constant 0 : index
      %c0_16 = arith.constant 0 : index
      %c0_17 = arith.constant 0 : index
      %34 = vector.load %arg4[%c0_15, %c0_16, %c0_17] : memref<1x1x128xf32, #tpu.memory_space<vmem>>, vector<1x1x128xf32>
      %35 = vector.shape_cast %34 : vector<1x1x128xf32> to vector<1x128xf32>
      %36 = vector.shape_cast %33 : vector<1x128xf32> to vector<1x1x128xf32>
      tpu.vector_store %arg4[%c0_15, %c0_16, %c0_17], %36 {strides = array<i32>} : memref<1x1x128xf32, #tpu.memory_space<vmem>>, vector<1x1x128xf32>,
    } else {
    }
    return
  }
  func.func @transform_0(%arg0: i32, %arg1: i32) -> (i32, i32) {
    %c1_i32 = arith.constant 1 : i32
    %0 = arith.muli %arg0, %c1_i32 : i32
    %1 = arith.addi %0, %arg1 : i32
    %c0_i32 = arith.constant 0 : i32
    %c0_i32_0 = arith.constant 0 : i32
    return %1, %c0_i32 : i32, i32
  }
  func.func @transform_1(%arg0: i32, %arg1: i32) -> (i32, i32) {
    %c1_i32 = arith.constant 1 : i32
    %0 = arith.muli %arg0, %c1_i32 : i32
    %1 = arith.addi %0, %arg1 : i32
    %c0_i32 = arith.constant 0 : i32
    %c0_i32_0 = arith.constant 0 : i32
    return %1, %c0_i32 : i32, i32
  }
  func.func @transform_2(%arg0: i32, %arg1: i32) -> (i32, i32, i32) {
    %c0_i32 = arith.constant 0 : i32
    %c0_i32_0 = arith.constant 0 : i32
    %c0_i32_1 = arith.constant 0 : i32
    return %arg0, %c0_i32, %c0_i32_0 : i32, i32, i32
  }
}

</mosaic_0001>

<bundles_post_ra>
// kernel: tpu_custom_call.1
= control target key start
LH: loop header
LB: loop body
LE: loop exit
PB: predicated region body
PF: predicated region fallthrough
CT: control target
= control target key end

     0   :  { %7 = vsyncpa [#allocation4], 0  ;;  %s866_s0 = inlined_call_operand.hbm [shape: f32[16,128], index: 0, kind: input, shape index: {}]   ;;  %s867_s1 = inlined_call_operand.hbm [shape: f32[16,128], index: 1, kind: input, shape index: {}]   ;;  %s868_s2 = inlined_call_operand.hbm [shape: f32[2,1,128], index: 2, kind: output, shape index: {}]  }
   0x1   :  { %9 = vsyncpa [#allocation4 + $0x1], 0 }
   0x2   :  { %10 = vsyncpa [#allocation7], 0 }
   0x3   :  { %12 = vsyncpa [#allocation7 + $0x1], 0 }
   0x4   :  { %13 = vsyncpa [#allocation5], 0 }
   0x5   :  { %15 = vsyncpa [#allocation5 + $0x1], 0  ;;  %s642_s9 = smov 0   ;;  %s644_s10 = smov 0  }
   0x6   :  { %s646_s11 = smov 0   ;;  %s648_s12 = smov 0  }
   0x7   :  { %s650_s13 = smov 0   ;;  %s652_s14 = smov 0  }
   0x8 LB: > { %s386_s15 = sadd.s32 4294967295, %s621_s14   ;;  %s387_s16 = sadd.s32 4294967294, %s621_s14   ;;  %s621_s14 = sphi %s652_s14, %s21_s14   ;;  %s617_s13 = sphi %s650_s13, %s888_s13   ;;  %s613_s12 = sphi %s648_s12, %s887_s12   ;;  %s609_s11 = sphi %s646_s11, %s886_s11   ;;  %s605_s10 = sphi %s644_s10, %s885_s10   ;;  %s601_s9 = sphi %s642_s9, %s884_s9  }
   0x9   : > { %s33_s17 = sadd.s32 1, %s617_s13  ;;  %s42_s18 = sadd.s32 1, %s609_s11 }
   0xa   : > { %p35_p0 = scmp.ge.s32.totalorder %s33_s17, 2  ;;  %p49_p1 = scmp.ne.s32.totalorder %s609_s11, %s605_s10 }
   0xb   : > { %p50_p2 = scmp.eq.s32.totalorder %s621_s14, 0  ;;  %p55_p3 = scmp.ne.s32.totalorder %s605_s10, %s601_s9 }
   0xc   : > { %s890_s17 = smov (%p35_p0, %s33_s17), 0  ;;  %p56_p5 = scmp.eq.s32.totalorder %s386_s15, 0 }
   0xd   : > { %p683_p4 = por %p50_p2, %p49_p1  ;;  %s39_s20 = ssub.s32 %s617_s13, %s890_s17 }
   0xe   : > { %p107_p6 = scmp.eq.s32.totalorder %s386_s15, 1  ;;  %p40_p7 = scmp.eq.s32.totalorder %s39_s20, 0 }
   0xf   : > { %p689_p8 = por %p56_p5, %p55_p3  ;;  %p113_p10 = scmp.eq.s32.totalorder %s387_s16, 1 }
  0x10   : > { %p693_p9 = por %p107_p6, %p49_p1  ;;  %p420_p13 = scmp.lt.s32.totalorder %s621_s14, 2 }
  0x11   : > { %s872_s21 = scalar_select %p689_p8, 1, 0 }
  0x12   : > { %s873_s22 = scalar_select %p693_p9, 1, 0 }
  0x13   : > { %s698_s23 = scalar_select %p40_p7, %s609_s11, %s42_s18  }
  0x14   : > { %p700_p11 = por %p113_p10, %p55_p3  ;;  %s707_s25 = sand.u32 1, %s609_s11  }
  0x15   : > { %s390_s26 = sshll.u32 %s707_s25, 3  ;;  %s391_s27 = sshll.u32 %s617_s13, 7 }
  0x16   : > { %s874_s24 = scalar_select %p700_p11, 1, 0 }
  0x17   : > { %s716_s30 = scalar_lea.hbm %s866_s0, %s391_s27  ;;  %s137_s3 = scalar_lea.vmem [#allocation3], %s390_s26 }
  0x18   : > { %s145_s4 = sshll.u32 %s137_s3, 4  ;;  %p724_p0 = pnand %p420_p13, %p683_p4  ;;  %s720_s4 = int_to_ptr.vmem [resolvable:$true] %s145_s4 }
  0x19   : > { %s134_s6 = scalar_lea.sflag [#allocation4], %s707_s25  ;;  %s475_s7 = scalar_lea.hbm %s716_s30, 128 }
  0x1a   : > { %p476_p3 = scmp.ne.s32.totalorder %s716_s30, %s475_s7  ;;  %p477_p5 = pneg %p724_p0 }
  0x1b   : > { %s480_s16 = scalar_lea.hbm %s866_s0, 256  ;;  %p481_p4 = scmp.lt.u32.totalorder %s716_s30, %s866_s0 }
  0x1c   : > { %p478_p6 = pnand %p477_p5, %p476_p3  ;;  %p482_p10 = scmp.lt.u32.totalorder %s480_s16, %s475_s7 }
  0x1d   : > { %p484_p12 = scmp.lt.u32.totalorder %s475_s7, %s716_s30 }
  0x1e   : > { %p479_p7 = pneg %p478_p6  ;;  %p483_p13 = por %p482_p10, %p481_p4 }
  0x20   : > { %p485_p1 = por %p484_p12, %p483_p13 }
  0x22   : > { %p486_p2 = pnand %p485_p1, %p479_p7 }
  0x24   : > { %489 = shalt.err (!%p486_p2)
}
  0x25   : > { %s490_s20 = scalar_lea.vmem %s720_s4, 128  ;;  %s623_s28 = smov [#allocation3]  }
  0x26   : > { %p491_p3 = scmp.ne.s32.totalorder %s720_s4, %s490_s20  ;;  %s495_s29 = sshll.u32 %s623_s28, 4  ;;  %s496_s29 = int_to_ptr.vmem [resolvable:$false] %s495_s29 }
  0x27   : > { %s497_s3 = scalar_lea.vmem %s496_s29, 256  ;;  %p498_p9 = scmp.lt.s32.totalorder %s720_s4, %s496_s29 }
  0x28   : > { %p493_p6 = pnand %p491_p3, %p477_p5  ;;  %p499_p4 = scmp.lt.s32.totalorder %s497_s3, %s490_s20 }
  0x2a   : > { %p494_p11 = pneg %p493_p6  ;;  %p500_p10 = por %p499_p4, %p498_p9 }
  0x2c   : > { %p501_p12 = pnand %p500_p10, %p494_p11 }
  0x2e   : > { %504 = shalt.err (!%p501_p12)
}
  0x2f   : > { %412 = dma.hbm_to_vmem [thread:$0]  (!%p724_p0), %s716_s30, 128, %s720_s4, %s134_s6  }
  0x30   : > { %p876_p1 = scmp.lt.s32.totalorder %s621_s14, 3  ;;  %p877_p2 = scmp.ge.s32.totalorder %s621_s14, 1 }
  0x31   : > { %s769_s16 = scalar_lea.hbm %s867_s1, %s391_s27  ;;  %s156_s18 = scalar_lea.vmem [#allocation6], %s390_s26 }
  0x32   : > { %p760_p7 = pnand %p877_p2, %p876_p1  ;;  %s164_s19 = sshll.u32 %s156_s18, 4  ;;  %s165_s19 = int_to_ptr.vmem [resolvable:$true] %s164_s19 }
  0x33   : > { %s153_s30 = scalar_lea.sflag [#allocation7], %s707_s25  ;;  %s505_s4 = scalar_lea.hbm %s769_s16, 128 }
  0x34   : > { %s878_s7 = scalar_select %p760_p7, 1, 0 }
  0x35   : > { %p506_p9 = scmp.ne.s32.totalorder %s769_s16, %s505_s4  ;;  %s510_s27 = scalar_lea.hbm %s867_s1, 256 }
  0x36   : > { %p511_p3 = scmp.lt.u32.totalorder %s769_s16, %s867_s1  ;;  %p512_p6 = scmp.lt.u32.totalorder %s510_s27, %s505_s4 }
  0x37   : > { %p508_p11 = pnand %p506_p9, %p477_p5  ;;  %p514_p10 = scmp.lt.u32.totalorder %s505_s4, %s769_s16 }
  0x38   : > { %p513_p4 = por %p512_p6, %p511_p3 }
  0x39   : > { %p509_p13 = pneg %p508_p11 }
  0x3a   : > { %p515_p12 = por %p514_p10, %p513_p4 }
  0x3c   : > { %p516_p1 = pnand %p515_p12, %p509_p13 }
  0x3e   : > { %519 = shalt.err (!%p516_p1)
}
  0x3f   : > { %s520_s25 = scalar_lea.vmem %s165_s19, 128  ;;  %s624_s26 = smov [#allocation6]  }
  0x40   : > { %p521_p2 = scmp.ne.s32.totalorder %s165_s19, %s520_s25  ;;  %s525_s3 = sshll.u32 %s624_s26, 4  ;;  %s526_s3 = int_to_ptr.vmem [resolvable:$false] %s525_s3 }
  0x41   : > { %s527_s8 = scalar_lea.vmem %s526_s3, 256  ;;  %p528_p8 = scmp.lt.s32.totalorder %s165_s19, %s526_s3 }
  0x42   : > { %p523_p9 = pnand %p521_p2, %p477_p5  ;;  %p529_p7 = scmp.lt.s32.totalorder %s527_s8, %s520_s25 }
  0x44   : > { %p524_p11 = pneg %p523_p9  ;;  %p530_p3 = por %p529_p7, %p528_p8 }
  0x46   : > { %p531_p6 = pnand %p530_p3, %p524_p11 }
  0x48   : > { %534 = shalt.err (!%p531_p6)
}
  0x49   : > { %415 = dma.hbm_to_vmem [thread:$0]  (!%p724_p0), %s769_s16, 128, %s165_s19, %s153_s30  }
  0x4a   : > { %p879_p13 = scmp.ne.s32.totalorder %s878_s7, 0 }
  0x4b   : > { %s796_s15 = sand.u32 (!%p879_p13), 1, %s605_s10   ;;  %p880_p5 = scmp.ne.s32.totalorder (!%p879_p13), %s872_s21, 0 }
  0x4c   : > { %173 = sbr.rel (%p879_p13) target bundleno = 167 (0xa7), region = 28  ;;  %s395_s18 = sshll.u32 (!%p879_p13), %s796_s15, 3 }
  0x4d   : > { %s176_s4 = scalar_lea.sflag (!%p879_p13), [#allocation4], %s796_s15  ;;  %s179_s6 = scalar_lea.vmem (!%p879_p13), [#allocation3], %s395_s18 }
  0x53   : > { %588 = dma.done.wait (%p880_p5), %s176_s4, 128  }
  0x54   : > { %590 = vsyncadd (%p880_p5), %s176_s4, 4294967168  ;;  %s185_s5 = scalar_lea.sflag [#allocation7], %s796_s15  ;;  %s188_s16 = scalar_lea.vmem [#allocation6], %s395_s18 }
  0x55   : > { %592 = dma.done.wait (%p880_p5), %s185_s5, 128  }
  0x56   : > { %594 = vsyncadd (%p880_p5), %s185_s5, 4294967168  ;;  %s397_s7 = sshll.u32 %s613_s12, 3  ;;  %v625_v0 = vmov 0.0   ;;  %v220_v1 = vld [vmem:[%s179_s6] sm:$0xff]  ;;  %v221_v4 = vld [vmem:[%s188_s16] sm:$0xff]  ;;  %s212_s21 = scalar_lea.vmem [#allocation8], %s796_s15 }
  0x57   : > { %219 = vst [vmem:[#allocation2] sm:$0x1] %v625_v0  ;;  %s810_s19 = sadd.s32 8, %s397_s7  ;;  %471 = vlog2.f32 %v220_v1  ;;  %v225_v2 = vsub.f32 1.0, %v220_v1  ;;  %v230_v9 = vsub.f32 1.0, %v221_v4 }
  0x58   : > { %p398_p8 = scmp.le.s32.totalorder %s810_s19, 16 }
  0x59   : > { %473 = vlog2.f32 %v225_v2  ;;  %v241_v15 = vlaneseq (!%p398_p8)  ;;  %v243_v16 = vstv (!%p398_p8), %s397_s7 }
  0x5b   : > { %v242_v17 = vshrl.u32 (!%p398_p8), %v241_v15, 7 }
  0x5d   : > { %v244_v18 = vadd.s32 (!%p398_p8), %v243_v16, %v242_v17 }
  0x5e   : > { %v247_v25 = vld [vmem:[#allocation2] sm:$0x1] (!%p398_p8) }
  0x5f   : > { %vm245_vm0 = vcmp.lt.s32.totalorder (!%p398_p8), %v244_v18, 16 }
  0x61   : > { %v472_v3 = vpop.eup %471 }
  0x62   : > { %v223_v5 = vmul.f32 0.6931472, %v472_v3 }
  0x63   : > { %v474_v6 = vpop.eup %473 }
  0x64   : > { %v224_v7 = vmax.f32 %v223_v5, -100.0  ;;  %v227_v8 = vmul.f32 0.6931472, %v474_v6 }
  0x66   : > { %v228_v10 = vmax.f32 %v227_v8, -100.0  ;;  %v229_v11 = vmul.f32 %v224_v7, %v221_v4  ;;  %240 = sbr.rel (%p398_p8) target bundleno = 126 (0x7e), region = 44 }
  0x68   : > { %v231_v12 = vmul.f32 %v230_v9, %v228_v10 }
  0x6a   : > { %v232_v13 = vadd.f32 %v231_v12, %v229_v11 }
  0x6c   : > { %v233_v14 = vsub.f32 0.0, %v232_v13 }
  0x6e   : > { %v246_v19 = vsel %vm245_vm0, %v233_v14, 0.0 }
  0x6f   : > { %v248_v20 = vrot.slane %v246_v19, 4 }
  0x71   : > { %v249_v21 = vadd.f32 %v248_v20, %v246_v19 }
  0x73   : > { %v250_v22 = vrot.slane %v249_v21, 2 }
  0x75   : > { %v251_v23 = vadd.f32 %v250_v22, %v249_v21 }
  0x77   : > { %v252_v24 = vrot.slane %v251_v23, 1 }
  0x79   : > { %v253_v26 = vadd.f32 %v252_v24, %v251_v23 }
  0x7b   : > { %v254_v27 = vadd.f32 %v253_v26, %v247_v25 }
  0x7d   : > { %255 = vst [vmem:[#allocation2] sm:$0x1] %v254_v27 }
  0x7e PF: > { %p399_p0 = scmp.gt.s32.totalorder %s810_s19, 16 }
  0x7f   : > { %v261_v28 = vrot.slane (!%p399_p0), %v233_v14, 4 }
  0x80   : > { %259 = sbr.rel (%p399_p0) target bundleno = 142 (0x8e), region = 48 }
  0x81   : > { %v262_v29 = vadd.f32 (!%p399_p0), %v261_v28, %v233_v14 }
  0x83   : > { %v263_v30 = vrot.slane (!%p399_p0), %v262_v29, 2 }
  0x84   : > { %v260_v33 = vld [vmem:[#allocation2] sm:$0x1] (!%p399_p0) }
  0x85   : > { %v264_v31 = vadd.f32 (!%p399_p0), %v263_v30, %v262_v29 }
  0x87   : > { %v265_v32 = vrot.slane %v264_v31, 1 }
  0x89   : > { %v266_v34 = vadd.f32 %v265_v32, %v264_v31 }
  0x8b   : > { %v267_v35 = vadd.f32 %v266_v34, %v260_v33 }
  0x8d   : > { %268 = vst [vmem:[#allocation2] sm:$0x1] %v267_v35 }
  0x8e PF: > { %s400_s30 = sshll.u32 %s613_s12, 4  ;;  %s287_s29 = sshll.u32 %s212_s21, 4  ;;  %s288_s29 = int_to_ptr.vmem [resolvable:$true] %s287_s29 }
  0x8f   : > { %s821_s28 = scalar_lea.hbm %s868_s2, %s400_s30  ;;  %s275_s25 = scalar_lea.sflag [#allocation5], %s796_s15 }
  0x90   : > { %s535_s26 = scalar_lea.vmem %s288_s29, 16  ;;  %p881_p4 = scmp.ne.s32.totalorder %s873_s22, 0 }
  0x91   : > { %p536_p7 = scmp.ne.s32.totalorder %s288_s29, %s535_s26  ;;  %s626_s3 = smov [#allocation8]  }
  0x92   : > { %s539_s8 = sshll.u32 %s626_s3, 4  ;;  %s540_s8 = int_to_ptr.vmem [resolvable:$false] %s539_s8 }
  0x93   : > { %p537_p10 = pnand %p536_p7, %p881_p4  ;;  %s541_s12 = scalar_lea.vmem %s540_s8, 32 }
  0x94   : > { %v272_v36 = vld [vmem:[#allocation2] sm:$0x1]  ;;  %p542_p1 = scmp.lt.s32.totalorder %s288_s29, %s540_s8  ;;  %p543_p2 = scmp.lt.s32.totalorder %s541_s12, %s535_s26 }
  0x95   : > { %273 = vst [vmem:[%s212_s21] sm:$0x1] %v272_v36  ;;  %p538_p12 = pneg %p537_p10 }
  0x96   : > { %p544_p9 = por %p543_p2, %p542_p1 }
  0x98   : > { %p545_p11 = pnand %p544_p9, %p538_p12 }
  0x9a   : > { %548 = shalt.err (!%p545_p11)
}
  0x9b   : > { %s549_s15 = scalar_lea.hbm %s821_s28, 16  ;;  %s553_s6 = scalar_lea.hbm %s868_s2, 32 }
  0x9c   : > { %p550_p3 = scmp.ne.s32.totalorder %s821_s28, %s549_s15  ;;  %p554_p5 = scmp.lt.u32.totalorder %s821_s28, %s868_s2 }
  0x9d   : > { %p555_p8 = scmp.lt.u32.totalorder %s553_s6, %s549_s15  ;;  %p557_p7 = scmp.lt.u32.totalorder %s549_s15, %s821_s28 }
  0x9e   : > { %p551_p6 = pnand %p550_p3, %p881_p4 }
  0x9f   : > { %p556_p0 = por %p555_p8, %p554_p5 }
  0xa0   : > { %p552_p13 = pneg %p551_p6 }
  0xa1   : > { %p558_p10 = por %p557_p7, %p556_p0 }
  0xa3   : > { %p559_p12 = pnand %p558_p10, %p552_p13 }
  0xa5   : > { %562 = shalt.err (!%p559_p12)
}
  0xa6   : > { %407 = dma.vmem_to_hbm [thread:$0]  (%p881_p4), %s288_s29, 16, %s821_s28, %s275_s25  }
  0xa7 PF: > { %s299_s7 = sand.u32 1, %s601_s9   ;;  %p882_p1 = scmp.ne.s32.totalorder %s874_s24, 0 }
  0xa8   : > { %p883_p2 = scmp.ge.s32.totalorder %s621_s14, 2  ;;  %s300_s19 = scalar_lea.sflag [#allocation5], %s299_s7 }
  0xaa   : > { %p417_p9 = pnand %p883_p2, %p882_p1 }
  0xac   : > { %596 = dma.done.wait (!%p417_p9), %s300_s19, 16  }
  0xad   : > { %598 = vsyncadd (!%p417_p9), %s300_s19, 4294967280  ;;  %s21_s14 = sadd.s32 1, %s621_s14   ;;  %s884_s9 = smov %s605_s10 }
  0xae   : > { %p18_p11 = scmp.ge.s32.totalorder %s21_s14, 4   ;;  %s885_s10 = smov %s609_s11 }
  0xaf   : > { %s886_s11 = smov %s698_s23  ;;  %s887_s12 = smov %s617_s13 }
  0xb0   : > { %s888_s13 = smov %s890_s17  ;;  %20 = sbr.rel (!%p18_p11) target bundleno = 8 (0x8), region = 102 }
  0xb7   :  { %304 = vsyncpa [#allocation4], 1 }
  0xb8   :  { %306 = vsyncpa [#allocation4 + $0x1], 1 }
  0xb9   :  { %307 = vsyncpa [#allocation7], 1 }
  0xba   :  { %309 = vsyncpa [#allocation7 + $0x1], 1 }
  0xbb   :  { %310 = vsyncpa [#allocation5], 1 }
  0xbc   :  { %312 = vsyncpa [#allocation5 + $0x1], 1 }

</bundles_post_ra>
